<compile_context>
chip_gen: v7x
topology: tpu7x:2x2x1
jax: 0.10.0
libtpu: 0.0.40
codegen_flags: <defaults>
</compile_context>

<pallas_src>
import functools

import jax
import jax.numpy as jnp
from jax import lax
from jax.experimental import pallas as pl
from jax.experimental.pallas import tpu as pltpu


# ----------------------------------------------------------------------------
# Configuration / hardware query
# ----------------------------------------------------------------------------
_NUM_CORES = 2          # v7x megacore split; harmless outer loop on 1-TC chips
STREAM_IN_BF16 = False  # optionally halve HBM bytes of the streamed operand


def _tpu_vmem_capacity_bytes():
    try:
        return int(pltpu.get_tpu_info().vmem_capacity_bytes)
    except Exception:
        return 64 * 1024 * 1024  # conservative fallback (safe on all gens)


_VMEM_CAP_BYTES = _tpu_vmem_capacity_bytes()
# ~75% of physical VMEM: ~96 MiB on v5e/v6e (128 MiB), ~48 MiB on v7x (64 MiB).
_VMEM_LIMIT_BYTES = min((_VMEM_CAP_BYTES * 3) // 4, 112 * 1024 * 1024)
# Per streamed input buffer (Pallas double-buffers it).
_PER_BUF_CAP_BYTES = (16 * 1024 * 1024 if _VMEM_CAP_BYTES >= (96 << 20)
                      else 10 * 1024 * 1024)


def _round_up(x, m):
    return ((x + m - 1) // m) * m


def _cdiv(a, b):
    return (a + b - 1) // b


def _choose_tk(bc, hw, itemsize):
    """Reduction-tile width (lane dim), multiple of 128, sized from VMEM."""
    hw_128 = _round_up(hw, 128)
    # Per-core VMEM footprint: 2x (bc, tk) input buffers (double-buffered by
    # Pallas) + 2x (bc, bc) f32 output buffers + compiler scratch margin.
    fixed = 2 * bc * bc * 4 + (2 << 20)
    avail = max(_VMEM_LIMIT_BYTES - fixed, 1 << 20)
    per_buf = min(avail // 2, _PER_BUF_CAP_BYTES)
    max_cols = (per_buf // max(1, bc * itemsize)) // 128 * 128
    return int(max(128, min(hw_128, max_cols)))


# ----------------------------------------------------------------------------
# Kernel: partial (unscaled) gram accumulation over streamed HW tiles
# ----------------------------------------------------------------------------
def _partial_gram_kernel(f_ref, g_ref, *, tk, hw, n_k_per_core, ragged):
    k = pl.program_id(1)
    k_global = pl.program_id(0) * n_k_per_core + k

    @pl.when(k == 0)
    def _():
        g_ref[...] = jnp.zeros_like(g_ref)

    def accumulate():
        f = f_ref[...]
        if ragged:
            # Zero the columns past the real HW extent of this tile (the DMA
            # pad contents are unspecified).  No-op for fully valid tiles.
            limit = hw - k_global * tk
            col = lax.broadcasted_iota(jnp.int32, f.shape, 1)
            f = jnp.where(col < limit, f, jnp.zeros_like(f))
        # Contract the HW (last) dim of both operands: F_tile @ F_tile^T
        # without materializing a transpose.
        g_ref[...] += lax.dot_general(
            f, f,
            dimension_numbers=(((1,), (1,)), ((), ())),
            preferred_element_type=jnp.float32,
        )

    if ragged:
        # Duplicate (fully out-of-range) tiles of the last core contribute
        # nothing; skip their MXU work entirely.
        @pl.when(k_global * tk < hw)
        def _():
            accumulate()
    else:
        accumulate()


# ----------------------------------------------------------------------------
# Wrappers
# ----------------------------------------------------------------------------
@functools.partial(jax.jit, static_argnames=("tk_override",))
def _partial_grams(fm, tk_override=None):
    """Unscaled partial gram matrices, shape (n_cores, BC, BC), f32."""
    b, c, h, w = fm.shape
    bc, hw = b * c, h * w
    feats = fm.reshape(bc, hw)
    if STREAM_IN_BF16 and feats.dtype == jnp.float32:
        feats = feats.astype(jnp.bfloat16)
    itemsize = feats.dtype.itemsize

    tk = int(tk_override) if tk_override else _choose_tk(bc, hw, itemsize)
    n_k_total = _cdiv(hw, tk)
    n_cores = _NUM_CORES if n_k_total >= _NUM_CORES else 1
    n_k_per_core = _cdiv(n_k_total, n_cores)
    ragged = (n_cores * n_k_per_core * tk) != hw

    def feat_map(core, k):
        # Clamp so duplicate (fully out-of-range) tiles never DMA past the
        # array; their contribution is skipped inside the kernel.
        return (0, jnp.minimum(core * n_k_per_core + k, n_k_total - 1))

    kernel = functools.partial(
        _partial_gram_kernel,
        tk=tk, hw=hw, n_k_per_core=n_k_per_core, ragged=ragged,
    )

    return pl.pallas_call(
        kernel,
        out_shape=jax.ShapeDtypeStruct((n_cores, bc, bc), jnp.float32),
        grid=(n_cores, n_k_per_core),
        in_specs=[pl.BlockSpec((bc, tk), feat_map)],
        out_specs=pl.BlockSpec((None, bc, bc), lambda core, k: (core, 0, 0)),
        compiler_params=pltpu.CompilerParams(
            dimension_semantics=("parallel", "arbitrary"),
            vmem_limit_bytes=_VMEM_LIMIT_BYTES,
        ),
        cost_estimate=pl.CostEstimate(
            flops=2 * bc * bc * n_cores * n_k_per_core * tk,
            transcendentals=0,
            bytes_accessed=bc * hw * itemsize + n_cores * bc * bc * 4,
        ),
    )(feats)


@jax.jit
def _gram(fm):
    b, c, h, w = fm.shape
    scale = 1.0 / float(b * c * h * w)
    # Tiny (BC, BC) epilogue: combine per-core partials and apply the scale.
    return jnp.sum(_partial_grams(fm), axis=0) * scale


@jax.jit
def _style_loss(input_fm, style_gram):
    b, c, h, w = input_fm.shape
    scale = 1.0 / float(b * c * h * w)
    g = jnp.sum(_partial_grams(input_fm), axis=0) * scale
    diff = g - style_gram.astype(jnp.float32)
    return jnp.mean(diff * diff)


def gram_matrix(fm):
    """fm: (B, C, H, W) -> (B*C, B*C) gram, matching StyleLoss.gram_matrix."""
    return _gram(fm)


class StyleLoss:
    """JAX/Pallas port of the PyTorch StyleLoss module (forward pass)."""

    def __init__(self, style_fm):
        self.style_fm_gram = _gram(style_fm)

    def __call__(self, input_fm):
        return _style_loss(input_fm, self.style_fm_gram)


# ----------------------------------------------------------------------------
# Main
# ----------------------------------------------------------------------------
if __name__ == "__main__":
    key = jax.random.PRNGKey(0)
    k_style, k_input, k_extra = jax.random.split(key, 3)

    def ref_gram(fm):
        b, c, h, w = fm.shape
        f = fm.reshape(b * c, h * w)
        return (f @ f.T) / (b * c * h * w)

    # ---- main test: module-consistent small shapes ----
    B, C, H, W = 2, 4, 16, 16
    style_fm = jax.random.normal(k_style, (B, C, H, W), dtype=jnp.float32)
    input_fm = jax.random.normal(k_input, (B, C, H, W), dtype=jnp.float32)

    loss_mod = StyleLoss(style_fm)
    loss = loss_mod(input_fm)
    jax.block_until_ready(loss)

    ref = jnp.mean((ref_gram(input_fm) - ref_gram(style_fm)) ** 2)
    assert jnp.allclose(loss, ref, rtol=1e-5, atol=1e-6), (loss, ref)
    assert jnp.allclose(gram_matrix(input_fm), ref_gram(input_fm),
                        rtol=1e-5, atol=1e-6)

    # ---- extra test: force small TK to exercise the multi-tile / two-core /
    # ragged-tail code paths (HW = 400 is not a multiple of 128) ----
    extra_fm = jax.random.normal(k_extra, (2, 4, 20, 20), dtype=jnp.float32)
    bc_e, hw_e = 2 * 4, 20 * 20
    partials = _partial_grams(extra_fm, tk_override=128)
    g_e = jnp.sum(partials, axis=0) / float(bc_e * hw_e)
    jax.block_until_ready(g_e)
    assert jnp.allclose(g_e, ref_gram(extra_fm), rtol=1e-5, atol=1e-6)

    print("KERNEL_OK")
</pallas_src>

<mosaic_0001>
module attributes {stable_mosaic.version = 11 : i64} {
  func.func @_partial_gram_kernel(%arg0: i32, %arg1: i32, %arg2: memref<8x256xf32, #tpu.memory_space<vmem>>, %arg3: memref<1x8x8xf32, #tpu.memory_space<vmem>>) attributes {dimension_semantics = [#tpu.dimension_semantics<parallel>, #tpu.dimension_semantics<arbitrary>], iteration_bounds = array<i64: 1, 1>, scalar_prefetch = 0 : i64, scratch_operands = 0 : i64, tpu.core_type = #tpu.core_type<tc>, window_params = [{transform_indices = @transform_0, window_bounds = array<i64: 8, 256>}, {transform_indices = @transform_1, window_bounds = array<i64: 1, 8, 8>}]} {
    %c0_i32 = arith.constant 0 : i32
    %0 = arith.cmpi eq, %arg1, %c0_i32 : i32
    %1 = arith.extui %0 : i1 to i32
    %c0_i32_0 = arith.constant 0 : i32
    %2 = arith.cmpi ne, %1, %c0_i32_0 : i32
    scf.if %2 {
      %cst_8 = arith.constant 0.000000e+00 : f32
      %11 = vector.broadcast %cst_8 : f32 to vector<8x8xf32>
      %c0_9 = arith.constant 0 : index
      %c0_10 = arith.constant 0 : index
      %c0_11 = arith.constant 0 : index
      %12 = vector.load %arg3[%c0_9, %c0_10, %c0_11] : memref<1x8x8xf32, #tpu.memory_space<vmem>>, vector<1x8x8xf32>
      %13 = vector.shape_cast %12 : vector<1x8x8xf32> to vector<8x8xf32>
      %14 = vector.shape_cast %11 : vector<8x8xf32> to vector<1x8x8xf32>
      tpu.vector_store %arg3[%c0_9, %c0_10, %c0_11], %14 {strides = array<i32>} : memref<1x8x8xf32, #tpu.memory_space<vmem>>, vector<1x8x8xf32>,
    } else {
    }
    %c0 = arith.constant 0 : index
    %c0_1 = arith.constant 0 : index
    %3 = vector.load %arg2[%c0, %c0_1] : memref<8x256xf32, #tpu.memory_space<vmem>>, vector<8x256xf32>
    %c0_2 = arith.constant 0 : index
    %c0_3 = arith.constant 0 : index
    %c0_4 = arith.constant 0 : index
    %4 = vector.load %arg3[%c0_2, %c0_3, %c0_4] : memref<1x8x8xf32, #tpu.memory_space<vmem>>, vector<1x8x8xf32>
    %5 = vector.shape_cast %4 : vector<1x8x8xf32> to vector<8x8xf32>
    %cst = arith.constant dense<0.000000e+00> : vector<8x8xf32>
    %6 = tpu.matmul %3, %3, %cst {dimension_numbers = #tpu.dot_dimension_numbers<[1], [1], [0], [0], [0, 0, 1, 0], [], []>} : vector<8x256xf32>, vector<8x256xf32>, vector<8x8xf32> -> vector<8x8xf32>
    %7 = arith.addf %5, %6 : vector<8x8xf32>
    %c0_5 = arith.constant 0 : index
    %c0_6 = arith.constant 0 : index
    %c0_7 = arith.constant 0 : index
    %8 = vector.load %arg3[%c0_5, %c0_6, %c0_7] : memref<1x8x8xf32, #tpu.memory_space<vmem>>, vector<1x8x8xf32>
    %9 = vector.shape_cast %8 : vector<1x8x8xf32> to vector<8x8xf32>
    %10 = vector.shape_cast %7 : vector<8x8xf32> to vector<1x8x8xf32>
    tpu.vector_store %arg3[%c0_5, %c0_6, %c0_7], %10 {strides = array<i32>} : memref<1x8x8xf32, #tpu.memory_space<vmem>>, vector<1x8x8xf32>,
    return
  }
  func.func @transform_0(%arg0: i32, %arg1: i32) -> (i32, i32) {
    %c1_i32 = arith.constant 1 : i32
    %0 = arith.muli %arg0, %c1_i32 : i32
    %1 = arith.addi %0, %arg1 : i32
    %c0_i32 = arith.constant 0 : i32
    %2 = arith.minsi %1, %c0_i32 : i32
    %c0_i32_0 = arith.constant 0 : i32
    %c0_i32_1 = arith.constant 0 : i32
    return %c0_i32_0, %2 : i32, i32
  }
  func.func @transform_1(%arg0: i32, %arg1: i32) -> (i32, i32, i32) {
    %c0_i32 = arith.constant 0 : i32
    %c0_i32_0 = arith.constant 0 : i32
    %c0_i32_1 = arith.constant 0 : i32
    return %arg0, %c0_i32, %c0_i32_0 : i32, i32, i32
  }
}

</mosaic_0001>

<bundles_post_ra>
// kernel: _partial_grams.1
= control target key start
LH: loop header
LB: loop body
LE: loop exit
PB: predicated region body
PF: predicated region fallthrough
CT: control target
= control target key end

     0   :  { %vm45_vm0 = vcmask 64512   ;;  %s199_s0 = inlined_call_operand.vmem [shape: f32[8,256], index: 0, kind: input, shape index: {}]   ;;  %s200_s1 = inlined_call_operand.hbm [shape: f32[1,8,8], index: 1, kind: output, shape index: {}]  }
   0x1   :  { %v48_v0 = vld [vmem:[%s199_s0 + $0x8] sm:$0xff]  ;;  %v47_v1 = vld [vmem:[%s199_s0] sm:$0xff] }
   0x2   :  { %6 = vsyncpa [#allocation3], 0  ;;  %50 = vmatprep.subr.mxu0 %v48_v0  ;;  %114 = vmatprep.mubr.f32.mxu0 %v48_v0  ;;  %v169_v2 = vmov 0.0   ;;  %s170_s10 = smov [#allocation2]  }
   0x3   :  { %46 = vst.msk [vmem:[#allocation2] sm:$0xff] %vm45_vm0, %v169_v2  ;;  %51 = vmatpush1.xpose.msra.mxu0 %v47_v1  ;;  %s129_s11 = sshll.u32 %s170_s10, 4  ;;  %s130_s11 = int_to_ptr.vmem [resolvable:$true] %s129_s11 }
   0x4   :  { %s145_s12 = scalar_lea.vmem %s130_s11, 128  ;;  %p150_p1 = scmp.lt.s32.totalorder %s130_s11, %s130_s11 }
   0x5   :  { %p146_p0 = scmp.ne.s32.totalorder %s130_s11, %s145_s12  ;;  %p151_p2 = scmp.lt.s32.totalorder %s145_s12, %s145_s12 }
   0x6   :  { %115 = vmatmul.mubr.f32.vlgmr.msra.gmra.mrb[0].mxu0 %v47_v1 }
   0x7   :  { %p152_p3 = por %p151_p2, %p150_p1 }
   0x9   :  { %p153_p4 = pnand %p152_p3, %p146_p0 }
   0xa   :  { %v49_v3 = vld [vmem:[#allocation2] sm:$0xff] }
  0xd9   :  { %v116_v4 = vpop.f32.mrb[0].mxu0 }
  0xda   :  { %v120_v5 = vadd.f32 %v116_v4, %v49_v3  ;;  %v118_v6 = vpop.f32.mrb[1].mxu0 }
  0xdc   :  { %122 = vst.msk [vmem:[#allocation2] sm:$0xff] %vm45_vm0, %v120_v5 }
  0xdd   :  { %156 = shalt.err (!%p153_p4)
}
  0xde   :  { %s157_s14 = scalar_lea.hbm %s200_s1, 128 }
  0xdf   :  { %p158_p5 = scmp.ne.s32.totalorder %s200_s1, %s157_s14  ;;  %p161_p6 = scmp.lt.u32.totalorder %s157_s14, %s200_s1 }
  0xe1   :  { %p163_p7 = pnand %p161_p6, %p158_p5 }
  0xe3   :  { %166 = shalt.err (!%p163_p7)
}
  0xe4   :  { %132 = dma.vmem_to_hbm [thread:$0]  %s130_s11, 128, %s200_s1, [#allocation3]  }
  0xe5   :  { %167 = dma.done.wait [#allocation3], 128  }
  0xe6   :  { %168 = vsyncadd [#allocation3], 4294967168 }
  0xe7   :  { %136 = vsyncpa [#allocation3], 1 }

</bundles_post_ra>
